<compile_context>
chip_gen: v6e
topology: v6e:2x2x1
jax: 0.10.0
libtpu: 0.0.40
codegen_flags: <defaults>
</compile_context>

<pallas_src>
import jax
import jax.numpy as jnp
from jax.experimental import pallas as pl
from jax.experimental.pallas import tpu as pltpu


def _round_up(n, m):
    return ((n + m - 1) // m) * m


def _lane_tile(t, reps):
    """Replicate `t` `reps` times along the last (lane) axis via log-doubling."""
    pieces = []
    cur, r = t, reps
    while r:
        if r & 1:
            pieces.append(cur)
        r >>= 1
        if r:
            cur = jnp.concatenate([cur, cur], axis=-1)
    out = pieces[0]
    for piece in pieces[1:]:
        out = jnp.concatenate([out, piece], axis=-1)
    return out


def _cnn_metrics_kernel(x_ref, w1_ref, convp_ref, fcp_ref, out_ref):
    """One batch-block grid step.

    x_ref    : VMEM (TB, D) f32     input rows for this batch block
    w1_ref   : VMEM (C*D, H)        fc1 weight, flatten order, VMEM-resident
    convp_ref: VMEM (8, C*D) f32    rows: left tap, center tap, right tap,
                                    BN scale, BN+bias shift (lane-broadcast)
    fcp_ref  : VMEM (8, H) f32      rows: b1, ln_gamma, ln_beta, w2_row, b2
    out_ref  : VMEM (1, TB) f32     lane-dense output row for this block
    """
    TB, D = x_ref.shape
    CD, H = w1_ref.shape
    C = CD // D
    mxu_dtype = w1_ref.dtype

    # Conv1d(1->C, k=3, pad=1) + folded eval-mode BatchNorm1d as lane-dense
    # VPU FMAs on a (TB, C*D) slab in flatten order (lane c*D + i <- x[:, i]).
    xt = _lane_tile(x_ref[...], C)                                   # (TB, CD)
    zcol = jnp.zeros((TB, 1), xt.dtype)
    # Shifted taps: lane c*D+i -> x[:, i-1] / x[:, i+1].  Values that leak
    # across channel-group (or array) boundaries are multiplied by tap rows
    # that prepare_params zeroed at i==0 / i==D-1, i.e. the "same" padding.
    xl = jnp.concatenate([zcol, xt[:, :CD - 1]], axis=1)
    xr = jnp.concatenate([xt[:, 1:], zcol], axis=1)
    a = (xl * convp_ref[0:1, :] + xt * convp_ref[1:2, :]
         + xr * convp_ref[2:3, :])
    a = a * convp_ref[3:4, :] + convp_ref[4:5, :]
    a = jnp.where(a >= 0.0, a, 0.01 * a)       # LeakyReLU; Dropout=id (eval)

    # flatten @ fc1: one wide-K MXU contraction (K = C*D), f32 accumulation.
    z = jnp.dot(a.astype(mxu_dtype), w1_ref[...],
                preferred_element_type=jnp.float32)                 # (TB, H)
    z = z + fcp_ref[0:1, :]                                          # + b1

    # LayerNorm(H), eps=1e-5 (PyTorch default), + affine.
    mu = jnp.mean(z, axis=-1, keepdims=True)
    var = jnp.mean((z - mu) ** 2, axis=-1, keepdims=True)
    z = (z - mu) * jax.lax.rsqrt(var + 1e-5)
    z = z * fcp_ref[1:2, :] + fcp_ref[2:3, :]
    z = jnp.where(z >= 0.0, z, 0.01 * z)        # LeakyReLU; Dropout=id (eval)

    # Linear(H -> 1), emitted lane-dense as a (1, TB) row:
    # out[0, b] = sum_h w2[h] * z[b, h] + b2.
    y = jax.lax.dot_general(fcp_ref[3:4, :], z, (((1,), (1,)), ((), ())),
                            preferred_element_type=jnp.float32)      # (1, TB)
    out_ref[...] = (y + fcp_ref[4:5, 0:1]).astype(out_ref.dtype)


def prepare_params(p, input_dimension, mxu_dtype=jnp.bfloat16):
    """One-time parameter packing (hoisted out of the per-call path)."""
    D = input_dimension
    C = p["w_conv"].shape[0]                    # 32
    H = p["w1"].shape[0]                        # 64
    O = p["w2"].shape[0]
    assert p["w1"].shape[1] == C * D
    # TODO(synk): only output_dimension == 1 (the module's configuration) is
    # implemented; general O would use an (H, O) matmul in the tail.
    assert O == 1

    # Fold conv bias + eval-mode BatchNorm1d into a per-channel scale/shift.
    s = p["bn_gamma"] / jnp.sqrt(p["bn_var"] + 1e-5)                  # (C,)
    sh = (p["b_conv"] - p["bn_mean"]) * s + p["bn_beta"]              # (C,)

    # Lane-broadcast rows over C*D columns (flatten order c*D + i).
    pos = jnp.tile(jnp.arange(D), C)            # position i within channel grp
    t0 = jnp.repeat(p["w_conv"][:, 0].astype(jnp.float32), D)
    t1 = jnp.repeat(p["w_conv"][:, 1].astype(jnp.float32), D)
    t2 = jnp.repeat(p["w_conv"][:, 2].astype(jnp.float32), D)
    t0 = jnp.where(pos == 0, 0.0, t0)           # left tap hits zero padding
    t2 = jnp.where(pos == D - 1, 0.0, t2)       # right tap hits zero padding
    convp = jnp.zeros((8, C * D), jnp.float32)
    convp = convp.at[0].set(t0).at[1].set(t1).at[2].set(t2)
    convp = convp.at[3].set(jnp.repeat(s, D)).at[4].set(jnp.repeat(sh, D))

    # fc1 weight in flatten order (row c*D + i), MXU dtype (f32 accumulation).
    w1 = p["w1"].T.astype(mxu_dtype)                                  # (C*D, H)

    # fc-tail vectors packed into a single (8, H) f32 slab.
    fcp = jnp.zeros((8, H), jnp.float32)
    fcp = fcp.at[0].set(p["b1"]).at[1].set(p["ln_gamma"]).at[2].set(p["ln_beta"])
    fcp = fcp.at[3].set(p["w2"][0]).at[4].set(jnp.full((H,), p["b2"][0], jnp.float32))
    return {"convp": convp, "w1": w1, "fcp": fcp, "C": C, "D": D, "H": H}


def cnn_metrics_statistics_forward(x, prep):
    """x: (B, input_dimension) -> (B, 1) f32 (eval-mode forward)."""
    C, D, H = prep["C"], prep["D"], prep["H"]
    CD = C * D
    B = x.shape[0]
    assert x.shape[1] == D

    # Batch tiling: aim for >= 2 blocks (v7x has 2 TensorCores on the
    # "parallel" axis); cap TB at 256 to amortize per-grid-step overhead.
    B8 = _round_up(B, 8)
    if B8 <= 512:
        TB = _round_up(max(8, -(-B8 // 2)), 8)
    else:
        TB = 256
    Bp = _round_up(B, TB)
    nb = Bp // TB

    xp = x.astype(jnp.float32)
    if Bp != B:
        xp = jnp.pad(xp, ((0, Bp - B), (0, 0)))   # row padding only (no column pad copy)

    w_item = jnp.dtype(prep["w1"].dtype).itemsize
    # Rough VMEM footprint: double-buffered inputs + resident weight + the
    # compiler-managed lane-dense slabs.  Only raise the scoped limit if the
    # conservative default would not fit; cap at v7x's 64 MiB physical VMEM.
    vmem_est = (2 * TB * D * 4 + 2 * CD * H * w_item + 2 * 8 * CD * 4
                + 2 * 8 * H * 4 + 2 * TB * 4 + 5 * TB * CD * 4 + 2 * TB * H * 4)
    cp_kwargs = {"dimension_semantics": ("parallel",)}
    if vmem_est > (12 << 20):
        cp_kwargs["vmem_limit_bytes"] = int(min(vmem_est + (4 << 20), 64 << 20))

    cost = pl.CostEstimate(
        flops=int(2 * Bp * CD * H + 10 * Bp * CD + 14 * Bp * H),
        transcendentals=int(Bp),
        bytes_accessed=int(Bp * D * 4 + CD * H * w_item       # weight read once
                           + 8 * CD * 4 + 8 * H * 4 + Bp * 4),
    )

    out = pl.pallas_call(
        _cnn_metrics_kernel,
        out_shape=jax.ShapeDtypeStruct((nb, TB), jnp.float32),   # lane-dense
        grid_spec=pltpu.PrefetchScalarGridSpec(
            num_scalar_prefetch=0,
            grid=(nb,),
            in_specs=[
                pl.BlockSpec((TB, D), lambda i: (i, 0)),     # x block
                pl.BlockSpec((CD, H), lambda i: (0, 0)),     # fc1 weight (resident)
                pl.BlockSpec((8, CD), lambda i: (0, 0)),     # conv/BN broadcast rows
                pl.BlockSpec((8, H), lambda i: (0, 0)),      # fc-tail vectors
            ],
            out_specs=pl.BlockSpec((1, TB), lambda i: (i, 0)),
        ),
        compiler_params=pltpu.CompilerParams(**cp_kwargs),
        cost_estimate=cost,
    )(xp, prep["w1"], prep["convp"], prep["fcp"])
    return out.reshape(-1)[:B].reshape(B, 1)


def init_params(key, input_dimension, output_dimension=1):
    """Deterministic synthetic parameters matching the module's __init__ shapes."""
    D, C, H = input_dimension, 32, 64
    ks = jax.random.split(key, 6)
    return {
        "w_conv": jax.random.normal(ks[0], (C, 3), jnp.float32) / jnp.sqrt(3.0),
        "b_conv": jax.random.normal(ks[1], (C,), jnp.float32) * 0.1,
        "bn_gamma": jnp.ones((C,), jnp.float32),      # BatchNorm1d defaults
        "bn_beta": jnp.zeros((C,), jnp.float32),
        "bn_mean": jnp.zeros((C,), jnp.float32),      # running stats
        "bn_var": jnp.ones((C,), jnp.float32),
        "w1": jax.random.normal(ks[2], (H, C * D), jnp.float32) / jnp.sqrt(C * D),
        "b1": jax.random.normal(ks[3], (H,), jnp.float32) * 0.1,
        "ln_gamma": jnp.ones((H,), jnp.float32),      # LayerNorm defaults
        "ln_beta": jnp.zeros((H,), jnp.float32),
        "w2": jax.random.normal(ks[4], (output_dimension, H), jnp.float32) / jnp.sqrt(H),
        "b2": jax.random.normal(ks[5], (output_dimension,), jnp.float32) * 0.1,
    }


def reference_forward(x, p):
    """Pure-JAX mirror of the PyTorch forward (eval mode) for verification."""
    B, D = x.shape
    xpad = jnp.pad(x, ((0, 0), (1, 1)))
    taps = jnp.stack([xpad[:, k:k + D] for k in range(3)], axis=-1)       # (B, D, 3)
    conv = jnp.einsum("bdk,ck->bcd", taps, p["w_conv"]) + p["b_conv"][None, :, None]
    bn = (conv - p["bn_mean"][None, :, None]) / jnp.sqrt(p["bn_var"][None, :, None] + 1e-5)
    bn = bn * p["bn_gamma"][None, :, None] + p["bn_beta"][None, :, None]
    a = jnp.where(bn >= 0, bn, 0.01 * bn)
    flat = a.reshape(B, -1)
    z = flat @ p["w1"].T + p["b1"]
    mu = z.mean(-1, keepdims=True)
    var = ((z - mu) ** 2).mean(-1, keepdims=True)
    z = (z - mu) / jnp.sqrt(var + 1e-5)
    z = z * p["ln_gamma"] + p["ln_beta"]
    z = jnp.where(z >= 0, z, 0.01 * z)
    return z @ p["w2"].T + p["b2"]


if __name__ == "__main__":
    key = jax.random.PRNGKey(0)
    kx, kp = jax.random.split(key)
    batch, input_dimension, output_dimension = 4, 16, 1

    x = jax.random.normal(kx, (batch, input_dimension), jnp.float32)
    params = init_params(kp, input_dimension, output_dimension)
    ref = reference_forward(x, params)

    # f32 MXU path: tight check against the pure-JAX reference.
    prep_f32 = prepare_params(params, input_dimension, mxu_dtype=jnp.float32)
    out_f32 = cnn_metrics_statistics_forward(x, prep_f32)
    jax.block_until_ready(out_f32)
    assert out_f32.shape == (batch, output_dimension)
    assert jnp.allclose(out_f32, ref, atol=1e-4, rtol=1e-4)

    # Multi-block path (nb >= 2, padded last block) with the f32 weights.
    x2 = jax.random.normal(jax.random.PRNGKey(1), (20, input_dimension), jnp.float32)
    out2 = cnn_metrics_statistics_forward(x2, prep_f32)
    jax.block_until_ready(out2)
    assert out2.shape == (20, output_dimension)
    assert jnp.allclose(out2, reference_forward(x2, params), atol=1e-4, rtol=1e-4)

    # Default bf16-weight MXU path (activations cast to bf16 at the MXU,
    # f32 accumulation) — production configuration, looser tolerance.
    prep_bf16 = prepare_params(params, input_dimension)
    out_bf16 = cnn_metrics_statistics_forward(x, prep_bf16)
    jax.block_until_ready(out_bf16)
    assert out_bf16.shape == (batch, output_dimension)
    assert jnp.allclose(out_bf16, ref, atol=1e-1, rtol=1e-1)

    print("KERNEL_OK")
</pallas_src>

<mosaic_0001>
module attributes {stable_mosaic.version = 11 : i64} {
  func.func @_cnn_metrics_kernel(%arg0: i32, %arg1: memref<8x16xf32, #tpu.memory_space<vmem>>, %arg2: memref<512x64xf32, #tpu.memory_space<vmem>>, %arg3: memref<8x512xf32, #tpu.memory_space<vmem>>, %arg4: memref<8x64xf32, #tpu.memory_space<vmem>>, %arg5: memref<1x8xf32, #tpu.memory_space<vmem>>) attributes {dimension_semantics = [#tpu.dimension_semantics<parallel>], iteration_bounds = array<i64: 1>, scalar_prefetch = 0 : i64, scratch_operands = 0 : i64, tpu.core_type = #tpu.core_type<tc>, window_params = [{transform_indices = @transform_0, window_bounds = array<i64: 8, 16>}, {pipeline_mode = #tpu.pipeline_mode<synchronous>, transform_indices = @transform_1, window_bounds = array<i64: 512, 64>}, {pipeline_mode = #tpu.pipeline_mode<synchronous>, transform_indices = @transform_2, window_bounds = array<i64: 8, 512>}, {pipeline_mode = #tpu.pipeline_mode<synchronous>, transform_indices = @transform_3, window_bounds = array<i64: 8, 64>}, {transform_indices = @transform_4, window_bounds = array<i64: 1, 8>}]} {
    %c0 = arith.constant 0 : index
    %c0_0 = arith.constant 0 : index
    %0 = vector.load %arg1[%c0, %c0_0] : memref<8x16xf32, #tpu.memory_space<vmem>>, vector<8x16xf32>
    %1 = tpu.concatenate %0, %0 in 1 : vector<8x16xf32>, vector<8x16xf32> -> vector<8x32xf32>
    %2 = tpu.concatenate %1, %1 in 1 : vector<8x32xf32>, vector<8x32xf32> -> vector<8x64xf32>
    %3 = tpu.concatenate %2, %2 in 1 : vector<8x64xf32>, vector<8x64xf32> -> vector<8x128xf32>
    %4 = tpu.concatenate %3, %3 in 1 : vector<8x128xf32>, vector<8x128xf32> -> vector<8x256xf32>
    %5 = tpu.concatenate %4, %4 in 1 : vector<8x256xf32>, vector<8x256xf32> -> vector<8x512xf32>
    %cst = arith.constant 0.000000e+00 : f32
    %6 = vector.broadcast %cst : f32 to vector<8x1xf32>
    %7 = vector.extract_strided_slice %5 {offsets = [0, 0], sizes = [8, 511], strides = [1, 1]} : vector<8x512xf32> to vector<8x511xf32>
    %8 = tpu.concatenate %6, %7 in 1 : vector<8x1xf32>, vector<8x511xf32> -> vector<8x512xf32>
    %9 = vector.extract_strided_slice %5 {offsets = [0, 1], sizes = [8, 511], strides = [1, 1]} : vector<8x512xf32> to vector<8x511xf32>
    %10 = tpu.concatenate %9, %6 in 1 : vector<8x511xf32>, vector<8x1xf32> -> vector<8x512xf32>
    %c0_1 = arith.constant 0 : index
    %c0_2 = arith.constant 0 : index
    %11 = vector.load %arg3[%c0_1, %c0_2] : memref<8x512xf32, #tpu.memory_space<vmem>>, vector<1x512xf32>
    %12 = vector.broadcast %11 : vector<1x512xf32> to vector<8x512xf32>
    %13 = arith.mulf %8, %12 : vector<8x512xf32>
    %c1 = arith.constant 1 : index
    %c0_3 = arith.constant 0 : index
    %14 = vector.load %arg3[%c1, %c0_3] : memref<8x512xf32, #tpu.memory_space<vmem>>, vector<1x512xf32>
    %15 = vector.broadcast %14 : vector<1x512xf32> to vector<8x512xf32>
    %16 = arith.mulf %5, %15 : vector<8x512xf32>
    %17 = arith.addf %13, %16 : vector<8x512xf32>
    %c2 = arith.constant 2 : index
    %c0_4 = arith.constant 0 : index
    %18 = vector.load %arg3[%c2, %c0_4] : memref<8x512xf32, #tpu.memory_space<vmem>>, vector<1x512xf32>
    %19 = vector.broadcast %18 : vector<1x512xf32> to vector<8x512xf32>
    %20 = arith.mulf %10, %19 : vector<8x512xf32>
    %21 = arith.addf %17, %20 : vector<8x512xf32>
    %c3 = arith.constant 3 : index
    %c0_5 = arith.constant 0 : index
    %22 = vector.load %arg3[%c3, %c0_5] : memref<8x512xf32, #tpu.memory_space<vmem>>, vector<1x512xf32>
    %23 = vector.broadcast %22 : vector<1x512xf32> to vector<8x512xf32>
    %24 = arith.mulf %21, %23 : vector<8x512xf32>
    %c4 = arith.constant 4 : index
    %c0_6 = arith.constant 0 : index
    %25 = vector.load %arg3[%c4, %c0_6] : memref<8x512xf32, #tpu.memory_space<vmem>>, vector<1x512xf32>
    %26 = vector.broadcast %25 : vector<1x512xf32> to vector<8x512xf32>
    %27 = arith.addf %24, %26 : vector<8x512xf32>
    %cst_7 = arith.constant 0.000000e+00 : f32
    %28 = vector.broadcast %cst_7 : f32 to vector<8x512xf32>
    %29 = arith.cmpf oge, %27, %28 : vector<8x512xf32>
    %cst_8 = arith.constant 0.00999999977 : f32
    %30 = vector.broadcast %cst_8 : f32 to vector<8x512xf32>
    %31 = arith.mulf %30, %27 : vector<8x512xf32>
    %32 = arith.select %29, %27, %31 : vector<8x512xi1>, vector<8x512xf32>
    %c0_9 = arith.constant 0 : index
    %c0_10 = arith.constant 0 : index
    %33 = vector.load %arg2[%c0_9, %c0_10] : memref<512x64xf32, #tpu.memory_space<vmem>>, vector<512x64xf32>
    %cst_11 = arith.constant dense<0.000000e+00> : vector<8x64xf32>
    %34 = tpu.matmul %32, %33, %cst_11 {dimension_numbers = #tpu.dot_dimension_numbers<[1], [0], [0], [1], [0, 0, 1, 1], [], []>} : vector<8x512xf32>, vector<512x64xf32>, vector<8x64xf32> -> vector<8x64xf32>
    %c0_12 = arith.constant 0 : index
    %c0_13 = arith.constant 0 : index
    %35 = vector.load %arg4[%c0_12, %c0_13] : memref<8x64xf32, #tpu.memory_space<vmem>>, vector<1x64xf32>
    %36 = vector.broadcast %35 : vector<1x64xf32> to vector<8x64xf32>
    %37 = arith.addf %34, %36 : vector<8x64xf32>
    %cst_14 = arith.constant dense<0.000000e+00> : vector<8xf32>
    %38 = vector.multi_reduction <add>, %37, %cst_14 [1] : vector<8x64xf32> to vector<8xf32>
    %39 = vector.shape_cast %38 : vector<8xf32> to vector<8x1xf32>
    %cst_15 = arith.constant 6.400000e+01 : f32
    %40 = vector.broadcast %cst_15 : f32 to vector<8x1xf32>
    %41 = arith.divf %39, %40 : vector<8x1xf32>
    %42 = vector.broadcast %41 : vector<8x1xf32> to vector<8x64xf32>
    %43 = arith.subf %37, %42 : vector<8x64xf32>
    %44 = arith.mulf %43, %43 : vector<8x64xf32>
    %cst_16 = arith.constant dense<0.000000e+00> : vector<8xf32>
    %45 = vector.multi_reduction <add>, %44, %cst_16 [1] : vector<8x64xf32> to vector<8xf32>
    %46 = vector.shape_cast %45 : vector<8xf32> to vector<8x1xf32>
    %cst_17 = arith.constant 6.400000e+01 : f32
    %47 = vector.broadcast %cst_17 : f32 to vector<8x1xf32>
    %48 = arith.divf %46, %47 : vector<8x1xf32>
    %49 = vector.broadcast %41 : vector<8x1xf32> to vector<8x64xf32>
    %50 = arith.subf %37, %49 : vector<8x64xf32>
    %cst_18 = arith.constant 9.99999974E-6 : f32
    %51 = vector.broadcast %cst_18 : f32 to vector<8x1xf32>
    %52 = arith.addf %48, %51 : vector<8x1xf32>
    %53 = math.rsqrt %52 : vector<8x1xf32>
    %54 = vector.broadcast %53 : vector<8x1xf32> to vector<8x64xf32>
    %55 = arith.mulf %50, %54 : vector<8x64xf32>
    %c1_19 = arith.constant 1 : index
    %c0_20 = arith.constant 0 : index
    %56 = vector.load %arg4[%c1_19, %c0_20] : memref<8x64xf32, #tpu.memory_space<vmem>>, vector<1x64xf32>
    %57 = vector.broadcast %56 : vector<1x64xf32> to vector<8x64xf32>
    %58 = arith.mulf %55, %57 : vector<8x64xf32>
    %c2_21 = arith.constant 2 : index
    %c0_22 = arith.constant 0 : index
    %59 = vector.load %arg4[%c2_21, %c0_22] : memref<8x64xf32, #tpu.memory_space<vmem>>, vector<1x64xf32>
    %60 = vector.broadcast %59 : vector<1x64xf32> to vector<8x64xf32>
    %61 = arith.addf %58, %60 : vector<8x64xf32>
    %cst_23 = arith.constant 0.000000e+00 : f32
    %62 = vector.broadcast %cst_23 : f32 to vector<8x64xf32>
    %63 = arith.cmpf oge, %61, %62 : vector<8x64xf32>
    %cst_24 = arith.constant 0.00999999977 : f32
    %64 = vector.broadcast %cst_24 : f32 to vector<8x64xf32>
    %65 = arith.mulf %64, %61 : vector<8x64xf32>
    %66 = arith.select %63, %61, %65 : vector<8x64xi1>, vector<8x64xf32>
    %c3_25 = arith.constant 3 : index
    %c0_26 = arith.constant 0 : index
    %67 = vector.load %arg4[%c3_25, %c0_26] : memref<8x64xf32, #tpu.memory_space<vmem>>, vector<1x64xf32>
    %cst_27 = arith.constant dense<0.000000e+00> : vector<1x8xf32>
    %68 = tpu.matmul %67, %66, %cst_27 {dimension_numbers = #tpu.dot_dimension_numbers<[1], [1], [0], [0], [0, 0, 1, 0], [], []>} : vector<1x64xf32>, vector<8x64xf32>, vector<1x8xf32> -> vector<1x8xf32>
    %c4_28 = arith.constant 4 : index
    %c0_29 = arith.constant 0 : index
    %69 = vector.load %arg4[%c4_28, %c0_29] : memref<8x64xf32, #tpu.memory_space<vmem>>, vector<1x1xf32>
    %70 = vector.broadcast %69 : vector<1x1xf32> to vector<1x8xf32>
    %71 = arith.addf %68, %70 : vector<1x8xf32>
    %c0_30 = arith.constant 0 : index
    %c0_31 = arith.constant 0 : index
    %72 = vector.load %arg5[%c0_30, %c0_31] : memref<1x8xf32, #tpu.memory_space<vmem>>, vector<1x8xf32>
    tpu.vector_store %arg5[%c0_30, %c0_31], %71 {strides = array<i32>} : memref<1x8xf32, #tpu.memory_space<vmem>>, vector<1x8xf32>,
    return
  }
  func.func @transform_0(%arg0: i32) -> (i32, i32) {
    %c0_i32 = arith.constant 0 : i32
    %c0_i32_0 = arith.constant 0 : i32
    return %arg0, %c0_i32 : i32, i32
  }
  func.func @transform_1(%arg0: i32) -> (i32, i32) {
    %c0_i32 = arith.constant 0 : i32
    %c0_i32_0 = arith.constant 0 : i32
    %c0_i32_1 = arith.constant 0 : i32
    return %c0_i32, %c0_i32_0 : i32, i32
  }
  func.func @transform_2(%arg0: i32) -> (i32, i32) {
    %c0_i32 = arith.constant 0 : i32
    %c0_i32_0 = arith.constant 0 : i32
    %c0_i32_1 = arith.constant 0 : i32
    return %c0_i32, %c0_i32_0 : i32, i32
  }
  func.func @transform_3(%arg0: i32) -> (i32, i32) {
    %c0_i32 = arith.constant 0 : i32
    %c0_i32_0 = arith.constant 0 : i32
    %c0_i32_1 = arith.constant 0 : i32
    return %c0_i32, %c0_i32_0 : i32, i32
  }
  func.func @transform_4(%arg0: i32) -> (i32, i32) {
    %c0_i32 = arith.constant 0 : i32
    %c0_i32_0 = arith.constant 0 : i32
    return %arg0, %c0_i32 : i32, i32
  }
}

</mosaic_0001>

<bundles_post_ra>
// kernel: tpu_custom_call.1
= control target key start
LH: loop header
LB: loop body
LE: loop exit
PB: predicated region body
PF: predicated region fallthrough
CT: control target
= control target key end

     0   :  { %s937_s0 = inlined_call_operand.vmem [shape: f32[8,16], index: 0, kind: input, shape index: {}]   ;;  %s938_s1 = inlined_call_operand.vmem [shape: f32[512,64], index: 1, kind: input, shape index: {}]   ;;  %s939_s2 = inlined_call_operand.vmem [shape: f32[8,512], index: 2, kind: input, shape index: {}]   ;;  %s940_s3 = inlined_call_operand.vmem [shape: f32[8,64], index: 3, kind: input, shape index: {}]   ;;  %s941_s4 = inlined_call_operand.hbm [shape: f32[1,8], index: 4, kind: output, shape index: {}]  }
   0x1   :  { %v18_v0 = vld [vmem:[%s937_s0] sm:$0xff] }
   0x2   :  { %9 = vsyncpa [#allocation3], 0  ;;  %s659_s17 = smov 16   ;;  %vm23_vm0 = vcmask 130048   ;;  %s660_s18 = smov 32   ;;  %v233_v3 = vld [vmem:[%s938_s1 + $0xf8] sm:$0xff] }
   0x3   :  { %20 = vrot.lane.b32.xlu0 %v18_v0, %s659_s17  ;;  %v265_v4 = vld [vmem:[%s938_s1 + $0x1f8] sm:$0xff]  ;;  %548 = vmatprep.subr.mxu0 %v233_v3  ;;  %v232_v7 = vld [vmem:[%s938_s1 + $0xf0] sm:$0xff]  ;;  %v231_v11 = vld [vmem:[%s938_s1 + $0xe8] sm:$0xff]  ;;  %vm29_vm1 = vcmask 261120   ;;  %s661_s19 = smov 64   ;;  %vm35_vm2 = vcmask 523264  }
   0x4   :  { %v217_v5 = vld [vmem:[%s938_s1 + $0x78] sm:$0xff]  ;;  %583 = vmatprep.subr.mxu1 %v265_v4  ;;  %v264_v8 = vld [vmem:[%s938_s1 + $0x1f0] sm:$0xff]  ;;  %v263_v12 = vld [vmem:[%s938_s1 + $0x1e8] sm:$0xff]  ;;  %s662_s9 = smov 127   ;;  %s663_s10 = smov 1   ;;  %vm45_vm3 = vcmask 1039360  }
   0x5   :  { %v249_v6 = vld [vmem:[%s938_s1 + $0x178] sm:$0xff]  ;;  %549 = vmatpush3.msra.mxu0 %v217_v5  ;;  %v216_v9 = vld [vmem:[%s938_s1 + $0x70] sm:$0xff]  ;;  %v215_v13 = vld [vmem:[%s938_s1 + $0x68] sm:$0xff]  ;;  %vm40_vm4 = vcmask 7168   ;;  %vm665_vm9 = vmmov 0   ;;  %s667_s6 = smov [#allocation2]  }
   0x6   :  { %584 = vmatpush3.msra.mxu1 %v249_v6  ;;  %v248_v10 = vld [vmem:[%s938_s1 + $0x170] sm:$0xff]  ;;  %550 = vmatprep.subr.mxu0 %v232_v7  ;;  %v247_v14 = vld [vmem:[%s938_s1 + $0x168] sm:$0xff]  ;;  %v230_v15 = vld [vmem:[%s938_s1 + $0xe0] sm:$0xff]  ;;  %v50_v7 = vlaneseq  ;;  %s531_s7 = sshll.u32 %s667_s6, 4  ;;  %vm523_vm11 = vcmask 57344   ;;  %s532_s7 = int_to_ptr.vmem [resolvable:$true] %s531_s7 }
   0x7   :  { %585 = vmatprep.subr.mxu1 %v264_v8  ;;  %551 = vmatpush3.msra.mxu0 %v216_v9  ;;  %v262_v16 = vld [vmem:[%s938_s1 + $0x1e0] sm:$0xff]  ;;  %v229_v19 = vld [vmem:[%s938_s1 + $0xd8] sm:$0xff]  ;;  %v228_v23 = vld [vmem:[%s938_s1 + $0xd0] sm:$0xff]  ;;  %s637_s8 = scalar_lea.vmem %s532_s7, 16  ;;  %p642_p1 = scmp.lt.s32.totalorder %s532_s7, %s532_s7 }
   0x8   :  { %586 = vmatpush3.msra.mxu1 %v248_v10  ;;  %552 = vmatprep.subr.mxu0 %v231_v11  ;;  %v214_v17 = vld [vmem:[%s938_s1 + $0x60] sm:$0xff]  ;;  %v261_v20 = vld [vmem:[%s938_s1 + $0x1d8] sm:$0xff]  ;;  %v260_v24 = vld [vmem:[%s938_s1 + $0x1d0] sm:$0xff]  ;;  %v51_v8 = vshrl.u32 %v50_v7, 7  ;;  %p638_p0 = scmp.ne.s32.totalorder %s532_s7, %s637_s8 }
   0x9   :  { %587 = vmatprep.subr.mxu1 %v263_v12  ;;  %v246_v18 = vld [vmem:[%s938_s1 + $0x160] sm:$0xff]  ;;  %553 = vmatpush3.msra.mxu0 %v215_v13  ;;  %v213_v21 = vld [vmem:[%s938_s1 + $0x58] sm:$0xff]  ;;  %v212_v25 = vld [vmem:[%s938_s1 + $0x50] sm:$0xff] }
   0xa   :  { %588 = vmatpush3.msra.mxu1 %v247_v14  ;;  %554 = vmatprep.subr.mxu0 %v230_v15  ;;  %v245_v22 = vld [vmem:[%s938_s1 + $0x158] sm:$0xff]  ;;  %v244_v27 = vld [vmem:[%s938_s1 + $0x150] sm:$0xff]  ;;  %v227_v28 = vld [vmem:[%s938_s1 + $0xc8] sm:$0xff]  ;;  %v893_v9 = vsub.s32 0, %v51_v8  ;;  %v56_v10 = vsub.s32 1, %v51_v8  ;;  %v60_v11 = vsub.s32 2, %v51_v8 }
   0xb   :  { %589 = vmatprep.subr.mxu1 %v262_v16  ;;  %555 = vmatpush3.msra.mxu0 %v214_v17  ;;  %v259_v30 = vld [vmem:[%s938_s1 + $0x1c8] sm:$0xff]  ;;  %v226_v33 = vld [vmem:[%s938_s1 + $0xc0] sm:$0xff]  ;;  %v225_v37 = vld [vmem:[%s938_s1 + $0xb8] sm:$0xff]  ;;  %v64_v12 = vsub.s32 3, %v51_v8 }
   0xc   :  { %590 = vmatpush3.msra.mxu1 %v246_v18  ;;  %556 = vmatprep.subr.mxu0 %v229_v19  ;;  %v211_v31 = vld [vmem:[%s938_s1 + $0x48] sm:$0xff]  ;;  %v258_v34 = vld [vmem:[%s938_s1 + $0x1c0] sm:$0xff]  ;;  %v257_v38 = vld [vmem:[%s938_s1 + $0x1b8] sm:$0xff] }
   0xd   :  { %591 = vmatprep.subr.mxu1 %v261_v20  ;;  %557 = vmatpush3.msra.mxu0 %v213_v21  ;;  %v243_v32 = vld [vmem:[%s938_s1 + $0x148] sm:$0xff]  ;;  %v210_v35 = vld [vmem:[%s938_s1 + $0x40] sm:$0xff]  ;;  %v209_v39 = vld [vmem:[%s938_s1 + $0x38] sm:$0xff] }
   0xe   :  { %592 = vmatpush3.msra.mxu1 %v245_v22  ;;  %558 = vmatprep.subr.mxu0 %v228_v23  ;;  %v242_v36 = vld [vmem:[%s938_s1 + $0x140] sm:$0xff]  ;;  %v241_v40 = vld [vmem:[%s938_s1 + $0x138] sm:$0xff]  ;;  %v224_v41 = vld [vmem:[%s938_s1 + $0xb0] sm:$0xff] }
   0xf   :  { %593 = vmatprep.subr.mxu1 %v260_v24  ;;  %559 = vmatpush3.msra.mxu0 %v212_v25  ;;  %v256_v42 = vld [vmem:[%s938_s1 + $0x1b0] sm:$0xff]  ;;  %v223_v45 = vld [vmem:[%s938_s1 + $0xa8] sm:$0xff]  ;;  %v222_v49 = vld [vmem:[%s938_s1 + $0xa0] sm:$0xff] }
  0x10   :  { %594 = vmatpush3.msra.mxu1 %v244_v27  ;;  %560 = vmatprep.subr.mxu0 %v227_v28  ;;  %v208_v43 = vld [vmem:[%s938_s1 + $0x30] sm:$0xff]  ;;  %v255_v46 = vld [vmem:[%s938_s1 + $0x1a8] sm:$0xff]  ;;  %v254_v50 = vld [vmem:[%s938_s1 + $0x1a0] sm:$0xff] }
  0x11   :  { %595 = vmatprep.subr.mxu1 %v259_v30  ;;  %561 = vmatpush3.msra.mxu0 %v211_v31  ;;  %v240_v44 = vld [vmem:[%s938_s1 + $0x130] sm:$0xff]  ;;  %v207_v47 = vld [vmem:[%s938_s1 + $0x28] sm:$0xff]  ;;  %v206_v51 = vld [vmem:[%s938_s1 + $0x20] sm:$0xff] }
  0x12   :  { %596 = vmatpush3.msra.mxu1 %v243_v32  ;;  %562 = vmatprep.subr.mxu0 %v226_v33  ;;  %v239_v48 = vld [vmem:[%s938_s1 + $0x128] sm:$0xff]  ;;  %v238_v52 = vld [vmem:[%s938_s1 + $0x120] sm:$0xff]  ;;  %v221_v53 = vld [vmem:[%s938_s1 + $0x98] sm:$0xff] }
  0x13   :  { %597 = vmatprep.subr.mxu1 %v258_v34  ;;  %563 = vmatpush3.msra.mxu0 %v210_v35  ;;  %v253_v54 = vld [vmem:[%s938_s1 + $0x198] sm:$0xff]  ;;  %v220_v57 = vld [vmem:[%s938_s1 + $0x90] sm:$0xff]  ;;  %v219_v61 = vld [vmem:[%s938_s1 + $0x88] sm:$0xff] }
  0x14   :  { %598 = vmatpush3.msra.mxu1 %v242_v36  ;;  %564 = vmatprep.subr.mxu0 %v225_v37  ;;  %v205_v55 = vld [vmem:[%s938_s1 + $0x18] sm:$0xff]  ;;  %v252_v58 = vld [vmem:[%s938_s1 + $0x190] sm:$0xff]  ;;  %v251_v62 = vld [vmem:[%s938_s1 + $0x188] sm:$0xff] }
  0x15   :  { %599 = vmatprep.subr.mxu1 %v257_v38  ;;  %565 = vmatpush3.msra.mxu0 %v209_v39  ;;  %v237_v56 = vld [vmem:[%s938_s1 + $0x118] sm:$0xff]  ;;  %v204_v59 = vld [vmem:[%s938_s1 + $0x10] sm:$0xff]  ;;  %v218_v3 = vld [vmem:[%s938_s1 + $0x80] sm:$0xff] }
  0x16   :  { %600 = vmatpush3.msra.mxu1 %v241_v40  ;;  %566 = vmatprep.subr.mxu0 %v224_v41  ;;  %v236_v60 = vld [vmem:[%s938_s1 + $0x110] sm:$0xff]  ;;  %v250_v4 = vld [vmem:[%s938_s1 + $0x180] sm:$0xff] }
  0x17   :  { %601 = vmatprep.subr.mxu1 %v256_v42  ;;  %567 = vmatpush3.msra.mxu0 %v208_v43  ;;  %v202_v5 = vld [vmem:[%s938_s1] sm:$0xff] }
  0x18   :  { %602 = vmatpush3.msra.mxu1 %v240_v44  ;;  %568 = vmatprep.subr.mxu0 %v223_v45  ;;  %v234_v6 = vld [vmem:[%s938_s1 + $0x100] sm:$0xff] }
  0x19   :  { %603 = vmatprep.subr.mxu1 %v255_v46  ;;  %569 = vmatpush3.msra.mxu0 %v207_v47  ;;  %v539_v13 = vld [vmem:[%s939_s2 + $0x1] ss:$8 sm:$0xf]  ;;  %v540_v14 = vld [vmem:[%s939_s2 + $0x2] ss:$8 sm:$0xf] }
  0x1a   :  { %604 = vmatpush3.msra.mxu1 %v239_v48  ;;  %570 = vmatprep.subr.mxu0 %v222_v49  ;;  %v48_v15 = vld [vmem:[%s939_s2] ss:$8 sm:$0xf]  ;;  %v80_v16 = vrot.slane %v539_v13, %v893_v9  ;;  %v84_v17 = vrot.slane %v539_v13, %v56_v10  ;;  %v88_v18 = vrot.slane %v539_v13, %v60_v11  ;;  %v541_v20 = vld [vmem:[%s939_s2 + $0x3] ss:$8 sm:$0xf] }
  0x1b   :  { %605 = vmatprep.subr.mxu1 %v254_v50  ;;  %571 = vmatpush3.msra.mxu0 %v206_v51  ;;  %v92_v19 = vrot.slane %v539_v13, %v64_v12  ;;  %v111_v21 = vrot.slane %v540_v14, %v893_v9  ;;  %v57_v22 = vrot.slane %v48_v15, %v56_v10  ;;  %v542_v44 = vld [vmem:[%s939_s2 + $0x4] ss:$8 sm:$0xf] }
  0x1c   :  { %606 = vmatpush3.msra.mxu1 %v238_v52  ;;  %572 = vmatprep.subr.mxu0 %v221_v53  ;;  %v61_v23 = vrot.slane %v48_v15, %v60_v11  ;;  %v123_v24 = vrot.slane %v540_v14, %v64_v12  ;;  %v53_v25 = vrot.slane %v48_v15, %v893_v9 }
  0x1d   :  { %607 = vmatprep.subr.mxu1 %v253_v54  ;;  %573 = vmatpush3.msra.mxu0 %v205_v55  ;;  %v115_v27 = vrot.slane %v540_v14, %v56_v10  ;;  %v119_v28 = vrot.slane %v540_v14, %v60_v11  ;;  %v146_v31 = vrot.slane %v541_v20, %v56_v10 }
  0x1e   :  { %608 = vmatpush3.msra.mxu1 %v237_v56  ;;  %574 = vmatprep.subr.mxu0 %v220_v57  ;;  %v154_v32 = vrot.slane %v541_v20, %v64_v12  ;;  %v150_v45 = vrot.slane %v541_v20, %v60_v11  ;;  %v142_v53 = vrot.slane %v541_v20, %v893_v9 }
  0x1f   :  { %609 = vmatprep.subr.mxu1 %v252_v58  ;;  %575 = vmatpush3.msra.mxu0 %v204_v59  ;;  %v173_v56 = vrot.slane %v542_v44, %v56_v10  ;;  %v177_v57 = vrot.slane %v542_v44, %v60_v11  ;;  %v181_v59 = vrot.slane %v542_v44, %v64_v12 }
  0x20   :  { %610 = vmatpush3.msra.mxu1 %v236_v60  ;;  %576 = vmatprep.subr.mxu0 %v219_v61  ;;  %v169_v61 = vrot.slane %v542_v44, %v893_v9 }
  0x21   :  { %611 = vmatprep.subr.mxu1 %v251_v62 }
  0x75   :  { %v21_v1 = vpop.permute.xlu0 %20 }
  0x76   :  { %v24_v2 = vsel %vm23_vm0, %v18_v0, %v21_v1  ;;  %v203_v0 = vld [vmem:[%s938_s1 + $0x8] sm:$0xff] }
  0x77   :  { %26 = vrot.lane.b32.xlu0 %v24_v2, %s660_s18  ;;  %v235_v1 = vld [vmem:[%s938_s1 + $0x108] sm:$0xff]  ;;  %577 = vmatpush3.msra.mxu0 %v203_v0 }
  0x78   :  { %612 = vmatpush3.msra.mxu1 %v235_v1  ;;  %578 = vmatprep.subr.mxu0 %v218_v3 }
  0x79   :  { %613 = vmatprep.subr.mxu1 %v250_v4  ;;  %579 = vmatpush3.msra.mxu0 %v202_v5 }
  0x7a   :  { %614 = vmatpush3.msra.mxu1 %v234_v6 }
  0xe9   :  { %v27_v26 = vpop.permute.xlu0 %26 }
  0xea   :  { %v771_v29 = vsel %vm29_vm1, %v24_v2, %v27_v26  ;;  %v65_v26 = vrot.slane %v48_v15, %v64_v12 }
  0xeb   :  { %32 = vrot.lane.b32.xlu1 %v771_v29, %s661_s19 }
 0x15d   :  { %v33_v63 = vpop.permute.xlu1 %32 }
 0x15e   :  { %v36_v2 = vsel %vm35_vm2, %v771_v29, %v33_v63 }
 0x15f   :  { %43 = vrot.lane.b32.xlu0 %v36_v2, %s662_s9  ;;  %38 = vrot.lane.b32.xlu1 %v36_v2, %s663_s10  ;;  %v97_v34 = vmul.f32 %v80_v16, %v36_v2  ;;  %v98_v35 = vmul.f32 %v84_v17, %v36_v2  ;;  %v99_v36 = vmul.f32 %v88_v18, %v36_v2  ;;  %v543_v16 = vld [vmem:[%s940_s3] ss:$0 sm:$0xff]  ;;  %s641_s9 = scalar_lea.vmem %s532_s7, 32 }
 0x160   :  { %v100_v40 = vmul.f32 %v92_v19, %v36_v2  ;;  %p643_p2 = scmp.lt.s32.totalorder %s641_s9, %s637_s8 }
 0x162   :  { %p644_p3 = por %p643_p2, %p642_p1 }
 0x164   :  { %p645_p4 = pnand %p644_p3, %p638_p0 }
 0x1d1   :  { %v44_v29 = vpop.permute.xlu0 %43  ;;  %v39_v30 = vpop.permute.xlu1 %38 }
 0x1d2   :  { %v47_v33 = vsel %vm45_vm3, %v44_v29, 0.0  ;;  %v42_v37 = vsel %vm40_vm4, 0.0, %v39_v30  ;;  %v71_v38 = vmul.f32 %v57_v22, %v39_v30  ;;  %v72_v39 = vmul.f32 %v61_v23, %v39_v30 }
 0x1d3   :  { %v131_v41 = vmul.f32 %v123_v24, %v47_v33  ;;  %v70_v42 = vmul.f32 %v53_v25, %v42_v37  ;;  %v73_v43 = vmul.f32 %v65_v26, %v39_v30  ;;  %v129_v46 = vmul.f32 %v115_v27, %v44_v29  ;;  %v441_v30 = vld [vmem:[%s940_s3 + $0x4] sm:$0x1] }
 0x1d4   :  { %v130_v47 = vmul.f32 %v119_v28, %v44_v29  ;;  %v102_v48 = vadd.f32 %v98_v35, %v71_v38  ;;  %v103_v49 = vadd.f32 %v99_v36, %v72_v39  ;;  %v128_v50 = vmul.f32 %v111_v21, %v44_v29  ;;  %v544_v36 = vld [vmem:[%s940_s3 + $0x1] ss:$0 sm:$0xff]  ;;  %v545_v38 = vld [vmem:[%s940_s3 + $0x2] ss:$0 sm:$0xff] }
 0x1d5   :  { %v101_v51 = vadd.f32 %v97_v34, %v70_v42  ;;  %v104_v52 = vadd.f32 %v100_v40, %v73_v43  ;;  %v664_v29 = vmov 0.0   ;;  %v440_v43 = vld [vmem:[%s940_s3 + $0x3] sm:$0x1] }
 0x1d6   :  { %v134_v54 = vadd.f32 %v130_v47, %v103_v49  ;;  %v133_v55 = vadd.f32 %v129_v46, %v102_v48  ;;  %620 = vmatprep.subr.mxu0 %v664_v29 }
 0x1d7   :  { %v135_v58 = vadd.f32 %v131_v41, %v104_v52  ;;  %v132_v60 = vadd.f32 %v128_v50, %v101_v51 }
 0x1d8   :  { %v160_v62 = vmul.f32 %v146_v31, %v133_v55  ;;  %v161_v63 = vmul.f32 %v150_v45, %v134_v54  ;;  %v666_v31 = vmov 0  }
 0x1d9   :  { %v162_v0 = vmul.f32 %v154_v32, %v135_v58  ;;  %v159_v1 = vmul.f32 %v142_v53, %v132_v60  ;;  %634 = vset.pattern.permute.xlu0 %v666_v31 }
 0x1da   :  { %v187_v2 = vadd.f32 %v173_v56, %v160_v62  ;;  %v188_v3 = vadd.f32 %v177_v57, %v161_v63 }
 0x1db   :  { %v189_v4 = vadd.f32 %v181_v59, %v162_v0  ;;  %v186_v5 = vadd.f32 %v169_v61, %v159_v1 }
 0x1dc   :  { %vm191_vm5 = vcmp.ge.f32.partialorder %v187_v2, 0.0  ;;  %v195_v6 = vmul.f32 0.01, %v187_v2  ;;  %vm192_vm6 = vcmp.ge.f32.partialorder %v188_v3, 0.0  ;;  %v196_v7 = vmul.f32 0.01, %v188_v3 }
 0x1dd   :  { %vm193_vm7 = vcmp.ge.f32.partialorder %v189_v4, 0.0  ;;  %v197_v8 = vmul.f32 0.01, %v189_v4  ;;  %vm190_vm8 = vcmp.ge.f32.partialorder %v186_v5, 0.0  ;;  %v194_v10 = vmul.f32 0.01, %v186_v5 }
 0x1de   :  { %v199_v11 = vsel %vm191_vm5, %v187_v2, %v195_v6  ;;  %v200_v12 = vsel %vm192_vm6, %v188_v3, %v196_v7 }
 0x1df   :  { %335 = vmatprep.mubr.f32.mxu0 %v199_v11  ;;  %v201_v9 = vsel %vm193_vm7, %v189_v4, %v197_v8  ;;  %v198_v13 = vsel %vm190_vm8, %v186_v5, %v194_v10 }
 0x1e0   :  { %405 = vmatprep.mubr.f32.mxu1 %v201_v9  ;;  %336 = vmatmul.mubr.f32.vlgmr.msra.gmra.mxu0 %v198_v13 }
 0x1e1   :  { %406 = vmatmul.mubr.f32.vlgmr.msra.gmra.mxu1 %v200_v12  ;;  %622 = vmatprep.mubr.msk.f32.mxu0 %vm665_vm9, %v664_v29 }
 0x2a0   :  { %v580_v14 = vpop.f32.mrf.mxu0 }
 0x2a1   :  { %v615_v15 = vpop.f32.mrf.mxu1 }
 0x2a2   :  { %v581_v17 = vpop.f32.mrf.mxu0 }
 0x2a3   :  { %v582_v18 = vadd.f32 %v581_v17, %v580_v14  ;;  %v616_v19 = vpop.f32.mrf.mxu1 }
 0x2a4   :  { %v617_v21 = vadd.f32 %v616_v19, %v615_v15 }
 0x2a5   :  { %v338_v20 = vadd.f32 %v582_v18, %v543_v16 }
 0x2a7   :  { %v408_v22 = vadd.f32 %v617_v21, %v338_v20 }
 0x2a9   :  { %v411_v23 = vsel %vm35_vm2, %v408_v22, 0.0 }
 0x2aa   :  { %412 = vadd.xlane.f32.xlu1 %v411_v23 }
 0x333   :  { %v413_v24 = vpop.xlane.xlu1 %412 }
 0x334   :  { %v415_v25 = vmul.f32 0.015625, %v413_v24 }
 0x336   :  { %v416_v26 = vsub.f32 %v408_v22, %v415_v25 }
 0x338   :  { %v417_v27 = vmul.f32 %v416_v26, %v416_v26 }
 0x33a   :  { %v418_v28 = vsel %vm35_vm2, %v417_v27, 0.0 }
 0x33b   :  { %419 = vadd.xlane.f32.xlu0 %v418_v28 }
 0x351   :  { %444 = vperm.xlu0 %634, %v441_v30  }
 0x3c4   :  { %v420_v32 = vpop.xlane.xlu0 %419 }
 0x3c5   :  { %v421_v33 = vmul.f32 0.015625, %v420_v32 }
 0x3c7   :  { %v422_v34 = vadd.f32 1e-05, %v421_v33 }
 0x3c9   :  { %635 = vrsqrt.f32 %v422_v34 }
 0x3cc   :  { %v445_v44 = vpop.permute.xlu0 %444 }
 0x3d6   :  { %v636_v35 = vpop.eup %635 }
 0x3d7   :  { %v424_v37 = vmul.f32 %v636_v35, %v416_v26 }
 0x3d9   :  { %v430_v39 = vmul.f32 %v544_v36, %v424_v37 }
 0x3db   :  { %v436_v40 = vadd.f32 %v545_v38, %v430_v39 }
 0x3dd   :  { %vm437_vm10 = vcmp.ge.f32.partialorder %v436_v40, 0.0  ;;  %v438_v41 = vmul.f32 0.01, %v436_v40 }
 0x3df   :  { %v439_v42 = vsel %vm437_vm10, %v436_v40, %v438_v41 }
 0x3e0   :  { %621 = vmatpush3.xpose.msk.msra.mxu0 %vm35_vm2, %v439_v42 }
 0x3e3   :  { %623 = vmatmul.mubr.msk.f32.vlgmr.msra.gmra.mxu0 %vm35_vm2, %v440_v43 }
 0x4a3   :  { %v519_v45 = vpop.f32.mrf.mxu0 }
 0x4a4   :  { %v520_v46 = vadd.f32 %v519_v45, %v445_v44 }
 0x4a5   :  { %v624_v47 = vpop.f32.mrf.mxu0 }
 0x4a6   :  { %524 = vst.msk [vmem:[#allocation2] sm:$0x1] %vm523_vm11, %v520_v46 }
 0x4a7   :  { %648 = shalt.err (!%p645_p4)
}
 0x4a8   :  { %534 = dma.vmem_to_hbm [thread:$0]  %s532_s7, 16, %s941_s4, [#allocation3]  }
 0x4a9   :  { %657 = dma.done.wait [#allocation3], 16  }
 0x4aa   :  { %658 = vsyncadd [#allocation3], 4294967280 }
 0x4ab   :  { %538 = vsyncpa [#allocation3], 1 }

</bundles_post_ra>
